<compile_context>
chip_gen: v5e
topology: v5e:2x2
jax: 0.10.0
libtpu: 0.0.40
codegen_flags: <defaults>
</compile_context>

<pallas_src>
import jax
import jax.numpy as jnp
from jax.experimental import pallas as pl
from jax.experimental.pallas import tpu as pltpu


def _round_up(n, m):
    return ((n + m - 1) // m) * m


# ----------------------------------------------------------------------------
# Fused kernel: all RNN layers + FC head for one batch block.
#   x_ref      (Bb, T, I8)  f32   native-width input, batch-major
#   h0_ref     (L, Bb, P)   f32
#   w_ih_t_ref (L, P, P)    mm    (transposed, zero-padded)
#   w_hh_t_ref (L, P, P)    mm
#   b_ref      (L, 1, P)    f32   (b_ih + b_hh)
#   w_fc_t_ref (P, O_pad)   mm
#   b_fc_ref   (1, O_pad)   f32
# Outputs:
#   out_ref    (Bb, O_pad)  f32
#   hn_ref     (L, Bb, P)   f32
# Scratch:
#   pre0_ref   (Bb*T, P)    mm    layer-0 pre-activations, (b, t) row order
#   seq_ref    (T*Bb, P)    mm    layer outputs / pre-activations, (t, b) order
# ----------------------------------------------------------------------------
def _simple_rnn_kernel(x_ref, h0_ref, w_ih_t_ref, w_hh_t_ref, b_ref,
                       w_fc_t_ref, b_fc_ref, out_ref, hn_ref,
                       pre0_ref, seq_ref):
    Bb, T, I8 = x_ref.shape
    L = h0_ref.shape[0]
    mm = w_hh_t_ref.dtype            # matmul operand dtype (bf16 or f32)

    for l in range(L):               # static, small layer count
        last_layer = l == L - 1

        # ---- Phase 1: hoisted input projection (one matmul per layer) -----
        if l == 0:
            inp = x_ref[...].reshape(Bb * T, I8).astype(mm)   # (b, t) rows
            w_in = w_ih_t_ref[0, :I8, :]                      # static slice
            pre0_ref[...] = (
                jnp.dot(inp, w_in, preferred_element_type=jnp.float32)
                + b_ref[0]).astype(mm)
        else:
            pre = (jnp.dot(seq_ref[...], w_ih_t_ref[l],       # (t, b) rows
                           preferred_element_type=jnp.float32)
                   + b_ref[l]).astype(mm)
            seq_ref[...] = pre

        # ---- Phase 2: serial recurrence (only h @ W_hh^T is sequential) ---
        w_hh_t = w_hh_t_ref[l]                                # (P, P)
        h = h0_ref[l]                                         # (Bb, P) f32
        for t in range(T):           # static unroll (small T at these shapes)
            if l == 0:
                # rows {b*T + t}: strided sublane load from (b, t) order.
                pre_t = pre0_ref[pl.ds(t, Bb, stride=T), :]
            else:
                pre_t = seq_ref[pl.ds(t * Bb, Bb), :]         # contiguous
            rec = jnp.dot(h.astype(mm), w_hh_t,
                          preferred_element_type=jnp.float32)
            h = jnp.tanh(pre_t.astype(jnp.float32) + rec)
            if not last_layer:       # last layer: only h_T is needed below
                seq_ref[pl.ds(t * Bb, Bb), :] = h.astype(mm)
        hn_ref[l] = h

    # ---- Fused FC head on the last hidden state of the last layer ---------
    out_ref[...] = (jnp.dot(h.astype(mm), w_fc_t_ref[...],
                            preferred_element_type=jnp.float32)
                    + b_fc_ref[...])


# ----------------------------------------------------------------------------
# One-time parameter packing: transpose, fuse biases, stack layers, pad to
# 128 lanes.  bf16 operands are the right default on EVERY TPU generation
# (the MXU is natively bf16; f32 x f32 costs ~3x the passes); accumulation
# and all elementwise math stay f32 inside the kernel.
# ----------------------------------------------------------------------------
def pack_params(params, matmul_dtype=jnp.bfloat16):
    rnn = params["rnn"]
    L = len(rnn)
    H = rnn[0]["w_hh"].shape[0]
    I = rnn[0]["w_ih"].shape[1]
    O = params["fc"]["w"].shape[0]
    P = _round_up(max(I, H), 128)
    O_pad = _round_up(O, 128)
    I8 = _round_up(I, 8)             # sublane granule; x is NOT padded to 128

    w_ih_t = jnp.zeros((L, P, P), matmul_dtype)
    w_hh_t = jnp.zeros((L, P, P), matmul_dtype)
    b = jnp.zeros((L, 1, P), jnp.float32)
    for l, lp in enumerate(rnn):
        in_sz = lp["w_ih"].shape[1]
        w_ih_t = w_ih_t.at[l, :in_sz, :H].set(lp["w_ih"].T.astype(matmul_dtype))
        w_hh_t = w_hh_t.at[l, :H, :H].set(lp["w_hh"].T.astype(matmul_dtype))
        b = b.at[l, 0, :H].set((lp["b_ih"] + lp["b_hh"]).astype(jnp.float32))

    w_fc_t = jnp.zeros((P, O_pad), matmul_dtype)
    w_fc_t = w_fc_t.at[:H, :O].set(params["fc"]["w"].T.astype(matmul_dtype))
    b_fc = jnp.zeros((1, O_pad), jnp.float32)
    b_fc = b_fc.at[0, :O].set(params["fc"]["b"].astype(jnp.float32))

    return {"w_ih_t": w_ih_t, "w_hh_t": w_hh_t, "b": b,
            "w_fc_t": w_fc_t, "b_fc": b_fc,
            "dims": (L, I, H, O, P, O_pad, I8),
            "matmul_dtype": matmul_dtype}


# ----------------------------------------------------------------------------
# Forward wrapper: no transpose / no 128-lane pad of x; single pallas_call
# with an optional batch-parallel grid; slices the padded outputs.
# ----------------------------------------------------------------------------
def simple_rnn_forward(packed, x, h0=None):
    L, I, H, O, P, O_pad, I8 = packed["dims"]
    mm = packed["matmul_dtype"]
    mm_bytes = jnp.dtype(mm).itemsize
    B, T, _ = x.shape

    x = x.astype(jnp.float32)                       # native f32 activations
    if I8 != I:                                     # tiny sublane round-up
        x = jnp.pad(x, ((0, 0), (0, 0), (0, I8 - I)))
    if h0 is None:
        h0_pad = jnp.zeros((L, B, P), jnp.float32)
    else:
        h0_pad = jnp.pad(h0.astype(jnp.float32),
                         ((0, 0), (0, 0), (0, P - H)))

    # v7x: two TensorCores -> split the (independent) batch across a
    # "parallel" grid axis when it divides into 8-sublane blocks.
    nb = 2 if (B % 16 == 0) else 1
    Bb = B // nb

    # Scoped-VMEM budget (generation-aware cap, v7x has 64 MiB) + cost hint.
    w_bytes = (2 * L * P * P + P * O_pad) * mm_bytes + (L * P + O_pad) * 4
    io_bytes = (Bb * T * I8 + 2 * L * Bb * P + Bb * O_pad) * 4
    scratch_bytes = 2 * T * Bb * P * mm_bytes
    vmem_need = 2 * (w_bytes + io_bytes) + scratch_bytes + T * Bb * P * 4
    vmem_limit = int(min(max(2 * vmem_need, 16 << 20), 48 << 20))

    flops = (2 * B * T * I8 * P + (L - 1) * 2 * B * T * P * P
             + L * T * 2 * B * P * P + 2 * B * P * O_pad)
    bytes_accessed = int(x.size * 4 + 2 * L * B * P * 4 + B * O_pad * 4
                         + w_bytes)
    cost = pl.CostEstimate(flops=int(flops),
                           transcendentals=int(L * T * B * P),
                           bytes_accessed=bytes_accessed)

    out_pad, hn_pad = pl.pallas_call(
        _simple_rnn_kernel,
        out_shape=(jax.ShapeDtypeStruct((B, O_pad), jnp.float32),
                   jax.ShapeDtypeStruct((L, B, P), jnp.float32)),
        grid=(nb,),
        in_specs=[
            pl.BlockSpec((Bb, T, I8), lambda i: (i, 0, 0)),     # x
            pl.BlockSpec((L, Bb, P), lambda i: (0, i, 0)),      # h0
            pl.BlockSpec((L, P, P), lambda i: (0, 0, 0)),       # W_ih^T
            pl.BlockSpec((L, P, P), lambda i: (0, 0, 0)),       # W_hh^T
            pl.BlockSpec((L, 1, P), lambda i: (0, 0, 0)),       # b_ih + b_hh
            pl.BlockSpec((P, O_pad), lambda i: (0, 0)),         # W_fc^T
            pl.BlockSpec((1, O_pad), lambda i: (0, 0)),         # b_fc
        ],
        out_specs=(
            pl.BlockSpec((Bb, O_pad), lambda i: (i, 0)),        # out
            pl.BlockSpec((L, Bb, P), lambda i: (0, i, 0)),      # hn
        ),
        scratch_shapes=[pltpu.VMEM((Bb * T, P), mm),            # layer-0 pre
                        pltpu.VMEM((T * Bb, P), mm)],           # seq buffer
        compiler_params=pltpu.CompilerParams(
            dimension_semantics=("parallel",),
            vmem_limit_bytes=vmem_limit),
        cost_estimate=cost,
    )(x, h0_pad, packed["w_ih_t"], packed["w_hh_t"], packed["b"],
      packed["w_fc_t"], packed["b_fc"])

    return out_pad[:, :O], hn_pad[:, :, :H]


# ----------------------------------------------------------------------------
# Deterministic parameter init (PyTorch-style uniform(-1/sqrt(H), 1/sqrt(H))).
# ----------------------------------------------------------------------------
def init_params(key, input_size, hidden_size, output_size, num_layers=1):
    params = {"rnn": [], "fc": {}}
    bound = 1.0 / jnp.sqrt(hidden_size)
    for l in range(num_layers):
        in_sz = input_size if l == 0 else hidden_size
        key, k1, k2, k3, k4 = jax.random.split(key, 5)
        params["rnn"].append({
            "w_ih": jax.random.uniform(k1, (hidden_size, in_sz), jnp.float32,
                                       -bound, bound),
            "w_hh": jax.random.uniform(k2, (hidden_size, hidden_size),
                                       jnp.float32, -bound, bound),
            "b_ih": jax.random.uniform(k3, (hidden_size,), jnp.float32,
                                       -bound, bound),
            "b_hh": jax.random.uniform(k4, (hidden_size,), jnp.float32,
                                       -bound, bound),
        })
    key, k5, k6 = jax.random.split(key, 3)
    params["fc"]["w"] = jax.random.uniform(k5, (output_size, hidden_size),
                                           jnp.float32, -bound, bound)
    params["fc"]["b"] = jax.random.uniform(k6, (output_size,), jnp.float32,
                                           -bound, bound)
    return params


# Pure-JAX reference (correctness check only).
def reference_forward(params, x, h0=None):
    B, T, _ = x.shape
    L = len(params["rnn"])
    H = params["rnn"][0]["w_hh"].shape[0]
    if h0 is None:
        h0 = jnp.zeros((L, B, H), jnp.float32)
    layer_in = x
    hns = []
    for l, lp in enumerate(params["rnn"]):
        h = h0[l]
        outs = []
        for t in range(T):
            h = jnp.tanh(layer_in[:, t, :] @ lp["w_ih"].T + lp["b_ih"]
                         + h @ lp["w_hh"].T + lp["b_hh"])
            outs.append(h)
        layer_in = jnp.stack(outs, axis=1)
        hns.append(h)
    out = layer_in[:, -1, :] @ params["fc"]["w"].T + params["fc"]["b"]
    return out, jnp.stack(hns, axis=0)


if __name__ == "__main__":
    B, T, I, H, O, L = 8, 8, 16, 32, 8, 2

    key = jax.random.PRNGKey(0)
    key_p, key_x, key_h = jax.random.split(key, 3)
    params = init_params(key_p, I, H, O, num_layers=L)
    x = jax.random.normal(key_x, (B, T, I), jnp.float32)
    h0 = 0.1 * jax.random.normal(key_h, (L, B, H), jnp.float32)

    ref_out, ref_hn = reference_forward(params, x)

    # f32 matmul-operand path (tight tolerance; all-f32 end to end).
    packed_f32 = pack_params(params, jnp.float32)
    out, hn = jax.block_until_ready(simple_rnn_forward(packed_f32, x))
    assert out.shape == (B, O) and hn.shape == (L, B, H)
    assert jnp.allclose(out, ref_out, atol=1e-4, rtol=1e-4)
    assert jnp.allclose(hn, ref_hn, atol=1e-4, rtol=1e-4)

    # Explicit-h0 path.
    out_h, hn_h = jax.block_until_ready(simple_rnn_forward(packed_f32, x, h0))
    ref_out_h, ref_hn_h = reference_forward(params, x, h0)
    assert jnp.allclose(out_h, ref_out_h, atol=1e-4, rtol=1e-4)
    assert jnp.allclose(hn_h, ref_hn_h, atol=1e-4, rtol=1e-4)

    # bf16 matmul-operand path (default packing; right for v5e/v6e/v7x).
    # f32 accumulation / add / tanh; tolerance covers bf16 operand rounding.
    packed_bf16 = pack_params(params)
    out_b, hn_b = jax.block_until_ready(simple_rnn_forward(packed_bf16, x))
    assert jnp.allclose(out_b, ref_out, atol=4e-2, rtol=4e-2)
    assert jnp.allclose(hn_b, ref_hn, atol=4e-2, rtol=4e-2)

    print("KERNEL_OK")
</pallas_src>

<mosaic_0001>
module attributes {stable_mosaic.version = 11 : i64} {
  func.func @_simple_rnn_kernel(%arg0: i32, %arg1: memref<8x8x16xf32, #tpu.memory_space<vmem>>, %arg2: memref<2x8x128xf32, #tpu.memory_space<vmem>>, %arg3: memref<2x128x128xf32, #tpu.memory_space<vmem>>, %arg4: memref<2x128x128xf32, #tpu.memory_space<vmem>>, %arg5: memref<2x1x128xf32, #tpu.memory_space<vmem>>, %arg6: memref<128x128xf32, #tpu.memory_space<vmem>>, %arg7: memref<1x128xf32, #tpu.memory_space<vmem>>, %arg8: memref<8x128xf32, #tpu.memory_space<vmem>>, %arg9: memref<2x8x128xf32, #tpu.memory_space<vmem>>, %arg10: memref<64x128xf32, #tpu.memory_space<vmem>>, %arg11: memref<64x128xf32, #tpu.memory_space<vmem>>) attributes {dimension_semantics = [#tpu.dimension_semantics<parallel>], iteration_bounds = array<i64: 1>, scalar_prefetch = 0 : i64, scratch_operands = 2 : i64, tpu.core_type = #tpu.core_type<tc>, window_params = [{transform_indices = @transform_0, window_bounds = array<i64: 8, 8, 16>}, {transform_indices = @transform_1, window_bounds = array<i64: 2, 8, 128>}, {pipeline_mode = #tpu.pipeline_mode<synchronous>, transform_indices = @transform_2, window_bounds = array<i64: 2, 128, 128>}, {pipeline_mode = #tpu.pipeline_mode<synchronous>, transform_indices = @transform_3, window_bounds = array<i64: 2, 128, 128>}, {pipeline_mode = #tpu.pipeline_mode<synchronous>, transform_indices = @transform_4, window_bounds = array<i64: 2, 1, 128>}, {pipeline_mode = #tpu.pipeline_mode<synchronous>, transform_indices = @transform_5, window_bounds = array<i64: 128, 128>}, {pipeline_mode = #tpu.pipeline_mode<synchronous>, transform_indices = @transform_6, window_bounds = array<i64: 1, 128>}, {transform_indices = @transform_7, window_bounds = array<i64: 8, 128>}, {transform_indices = @transform_8, window_bounds = array<i64: 2, 8, 128>}]} {
    %c0 = arith.constant 0 : index
    %c0_0 = arith.constant 0 : index
    %c0_1 = arith.constant 0 : index
    %0 = vector.load %arg1[%c0, %c0_0, %c0_1] : memref<8x8x16xf32, #tpu.memory_space<vmem>>, vector<8x8x16xf32>
    %1 = vector.shape_cast %0 : vector<8x8x16xf32> to vector<64x16xf32>
    %c0_2 = arith.constant 0 : index
    %c0_3 = arith.constant 0 : index
    %c0_4 = arith.constant 0 : index
    %2 = vector.load %arg3[%c0_2, %c0_3, %c0_4] : memref<2x128x128xf32, #tpu.memory_space<vmem>>, vector<1x16x128xf32>
    %3 = vector.shape_cast %2 : vector<1x16x128xf32> to vector<16x128xf32>
    %cst = arith.constant dense<0.000000e+00> : vector<64x128xf32>
    %4 = tpu.matmul %1, %3, %cst {dimension_numbers = #tpu.dot_dimension_numbers<[1], [0], [0], [1], [0, 0, 1, 1], [], []>} : vector<64x16xf32>, vector<16x128xf32>, vector<64x128xf32> -> vector<64x128xf32>
    %c0_5 = arith.constant 0 : index
    %c0_6 = arith.constant 0 : index
    %c0_7 = arith.constant 0 : index
    %5 = vector.load %arg5[%c0_5, %c0_6, %c0_7] : memref<2x1x128xf32, #tpu.memory_space<vmem>>, vector<1x1x128xf32>
    %6 = vector.shape_cast %5 : vector<1x1x128xf32> to vector<1x128xf32>
    %7 = vector.broadcast %6 : vector<1x128xf32> to vector<64x128xf32>
    %8 = arith.addf %4, %7 : vector<64x128xf32>
    %c0_8 = arith.constant 0 : index
    %c0_9 = arith.constant 0 : index
    %9 = vector.load %arg10[%c0_8, %c0_9] : memref<64x128xf32, #tpu.memory_space<vmem>>, vector<64x128xf32>
    tpu.vector_store %arg10[%c0_8, %c0_9], %8 {strides = array<i32>} : memref<64x128xf32, #tpu.memory_space<vmem>>, vector<64x128xf32>,
    %c0_10 = arith.constant 0 : index
    %c0_11 = arith.constant 0 : index
    %c0_12 = arith.constant 0 : index
    %10 = vector.load %arg4[%c0_10, %c0_11, %c0_12] : memref<2x128x128xf32, #tpu.memory_space<vmem>>, vector<1x128x128xf32>
    %11 = vector.shape_cast %10 : vector<1x128x128xf32> to vector<128x128xf32>
    %c0_13 = arith.constant 0 : index
    %c0_14 = arith.constant 0 : index
    %c0_15 = arith.constant 0 : index
    %12 = vector.load %arg2[%c0_13, %c0_14, %c0_15] : memref<2x8x128xf32, #tpu.memory_space<vmem>>, vector<1x8x128xf32>
    %13 = vector.shape_cast %12 : vector<1x8x128xf32> to vector<8x128xf32>
    %c0_16 = arith.constant 0 : index
    %c0_17 = arith.constant 0 : index
    %14 = tpu.strided_load %arg10[%c0_16, %c0_17] {strides = array<i32: 8, 1>} : memref<64x128xf32, #tpu.memory_space<vmem>>, vector<8x128xf32>
    %cst_18 = arith.constant dense<0.000000e+00> : vector<8x128xf32>
    %15 = tpu.matmul %13, %11, %cst_18 {dimension_numbers = #tpu.dot_dimension_numbers<[1], [0], [0], [1], [0, 0, 1, 1], [], []>} : vector<8x128xf32>, vector<128x128xf32>, vector<8x128xf32> -> vector<8x128xf32>
    %16 = arith.addf %14, %15 : vector<8x128xf32>
    %17 = math.tanh %16 : vector<8x128xf32>
    %c0_19 = arith.constant 0 : index
    %c0_20 = arith.constant 0 : index
    %18 = vector.load %arg11[%c0_19, %c0_20] : memref<64x128xf32, #tpu.memory_space<vmem>>, vector<8x128xf32>
    tpu.vector_store %arg11[%c0_19, %c0_20], %17 {strides = array<i32>} : memref<64x128xf32, #tpu.memory_space<vmem>>, vector<8x128xf32>,
    %c1 = arith.constant 1 : index
    %c0_21 = arith.constant 0 : index
    %19 = tpu.strided_load %arg10[%c1, %c0_21] {strides = array<i32: 8, 1>} : memref<64x128xf32, #tpu.memory_space<vmem>>, vector<8x128xf32>
    %cst_22 = arith.constant dense<0.000000e+00> : vector<8x128xf32>
    %20 = tpu.matmul %17, %11, %cst_22 {dimension_numbers = #tpu.dot_dimension_numbers<[1], [0], [0], [1], [0, 0, 1, 1], [], []>} : vector<8x128xf32>, vector<128x128xf32>, vector<8x128xf32> -> vector<8x128xf32>
    %21 = arith.addf %19, %20 : vector<8x128xf32>
    %22 = math.tanh %21 : vector<8x128xf32>
    %c8 = arith.constant 8 : index
    %c0_23 = arith.constant 0 : index
    %23 = vector.load %arg11[%c8, %c0_23] : memref<64x128xf32, #tpu.memory_space<vmem>>, vector<8x128xf32>
    tpu.vector_store %arg11[%c8, %c0_23], %22 {strides = array<i32>} : memref<64x128xf32, #tpu.memory_space<vmem>>, vector<8x128xf32>,
    %c2 = arith.constant 2 : index
    %c0_24 = arith.constant 0 : index
    %24 = tpu.strided_load %arg10[%c2, %c0_24] {strides = array<i32: 8, 1>} : memref<64x128xf32, #tpu.memory_space<vmem>>, vector<8x128xf32>
    %cst_25 = arith.constant dense<0.000000e+00> : vector<8x128xf32>
    %25 = tpu.matmul %22, %11, %cst_25 {dimension_numbers = #tpu.dot_dimension_numbers<[1], [0], [0], [1], [0, 0, 1, 1], [], []>} : vector<8x128xf32>, vector<128x128xf32>, vector<8x128xf32> -> vector<8x128xf32>
    %26 = arith.addf %24, %25 : vector<8x128xf32>
    %27 = math.tanh %26 : vector<8x128xf32>
    %c16 = arith.constant 16 : index
    %c0_26 = arith.constant 0 : index
    %28 = vector.load %arg11[%c16, %c0_26] : memref<64x128xf32, #tpu.memory_space<vmem>>, vector<8x128xf32>
    tpu.vector_store %arg11[%c16, %c0_26], %27 {strides = array<i32>} : memref<64x128xf32, #tpu.memory_space<vmem>>, vector<8x128xf32>,
    %c3 = arith.constant 3 : index
    %c0_27 = arith.constant 0 : index
    %29 = tpu.strided_load %arg10[%c3, %c0_27] {strides = array<i32: 8, 1>} : memref<64x128xf32, #tpu.memory_space<vmem>>, vector<8x128xf32>
    %cst_28 = arith.constant dense<0.000000e+00> : vector<8x128xf32>
    %30 = tpu.matmul %27, %11, %cst_28 {dimension_numbers = #tpu.dot_dimension_numbers<[1], [0], [0], [1], [0, 0, 1, 1], [], []>} : vector<8x128xf32>, vector<128x128xf32>, vector<8x128xf32> -> vector<8x128xf32>
    %31 = arith.addf %29, %30 : vector<8x128xf32>
    %32 = math.tanh %31 : vector<8x128xf32>
    %c24 = arith.constant 24 : index
    %c0_29 = arith.constant 0 : index
    %33 = vector.load %arg11[%c24, %c0_29] : memref<64x128xf32, #tpu.memory_space<vmem>>, vector<8x128xf32>
    tpu.vector_store %arg11[%c24, %c0_29], %32 {strides = array<i32>} : memref<64x128xf32, #tpu.memory_space<vmem>>, vector<8x128xf32>,
    %c4 = arith.constant 4 : index
    %c0_30 = arith.constant 0 : index
    %34 = tpu.strided_load %arg10[%c4, %c0_30] {strides = array<i32: 8, 1>} : memref<64x128xf32, #tpu.memory_space<vmem>>, vector<8x128xf32>
    %cst_31 = arith.constant dense<0.000000e+00> : vector<8x128xf32>
    %35 = tpu.matmul %32, %11, %cst_31 {dimension_numbers = #tpu.dot_dimension_numbers<[1], [0], [0], [1], [0, 0, 1, 1], [], []>} : vector<8x128xf32>, vector<128x128xf32>, vector<8x128xf32> -> vector<8x128xf32>
    %36 = arith.addf %34, %35 : vector<8x128xf32>
    %37 = math.tanh %36 : vector<8x128xf32>
    %c32 = arith.constant 32 : index
    %c0_32 = arith.constant 0 : index
    %38 = vector.load %arg11[%c32, %c0_32] : memref<64x128xf32, #tpu.memory_space<vmem>>, vector<8x128xf32>
    tpu.vector_store %arg11[%c32, %c0_32], %37 {strides = array<i32>} : memref<64x128xf32, #tpu.memory_space<vmem>>, vector<8x128xf32>,
    %c5 = arith.constant 5 : index
    %c0_33 = arith.constant 0 : index
    %39 = tpu.strided_load %arg10[%c5, %c0_33] {strides = array<i32: 8, 1>} : memref<64x128xf32, #tpu.memory_space<vmem>>, vector<8x128xf32>
    %cst_34 = arith.constant dense<0.000000e+00> : vector<8x128xf32>
    %40 = tpu.matmul %37, %11, %cst_34 {dimension_numbers = #tpu.dot_dimension_numbers<[1], [0], [0], [1], [0, 0, 1, 1], [], []>} : vector<8x128xf32>, vector<128x128xf32>, vector<8x128xf32> -> vector<8x128xf32>
    %41 = arith.addf %39, %40 : vector<8x128xf32>
    %42 = math.tanh %41 : vector<8x128xf32>
    %c40 = arith.constant 40 : index
    %c0_35 = arith.constant 0 : index
    %43 = vector.load %arg11[%c40, %c0_35] : memref<64x128xf32, #tpu.memory_space<vmem>>, vector<8x128xf32>
    tpu.vector_store %arg11[%c40, %c0_35], %42 {strides = array<i32>} : memref<64x128xf32, #tpu.memory_space<vmem>>, vector<8x128xf32>,
    %c6 = arith.constant 6 : index
    %c0_36 = arith.constant 0 : index
    %44 = tpu.strided_load %arg10[%c6, %c0_36] {strides = array<i32: 8, 1>} : memref<64x128xf32, #tpu.memory_space<vmem>>, vector<8x128xf32>
    %cst_37 = arith.constant dense<0.000000e+00> : vector<8x128xf32>
    %45 = tpu.matmul %42, %11, %cst_37 {dimension_numbers = #tpu.dot_dimension_numbers<[1], [0], [0], [1], [0, 0, 1, 1], [], []>} : vector<8x128xf32>, vector<128x128xf32>, vector<8x128xf32> -> vector<8x128xf32>
    %46 = arith.addf %44, %45 : vector<8x128xf32>
    %47 = math.tanh %46 : vector<8x128xf32>
    %c48 = arith.constant 48 : index
    %c0_38 = arith.constant 0 : index
    %48 = vector.load %arg11[%c48, %c0_38] : memref<64x128xf32, #tpu.memory_space<vmem>>, vector<8x128xf32>
    tpu.vector_store %arg11[%c48, %c0_38], %47 {strides = array<i32>} : memref<64x128xf32, #tpu.memory_space<vmem>>, vector<8x128xf32>,
    %c7 = arith.constant 7 : index
    %c0_39 = arith.constant 0 : index
    %49 = tpu.strided_load %arg10[%c7, %c0_39] {strides = array<i32: 8, 1>} : memref<64x128xf32, #tpu.memory_space<vmem>>, vector<8x128xf32>
    %cst_40 = arith.constant dense<0.000000e+00> : vector<8x128xf32>
    %50 = tpu.matmul %47, %11, %cst_40 {dimension_numbers = #tpu.dot_dimension_numbers<[1], [0], [0], [1], [0, 0, 1, 1], [], []>} : vector<8x128xf32>, vector<128x128xf32>, vector<8x128xf32> -> vector<8x128xf32>
    %51 = arith.addf %49, %50 : vector<8x128xf32>
    %52 = math.tanh %51 : vector<8x128xf32>
    %c56 = arith.constant 56 : index
    %c0_41 = arith.constant 0 : index
    %53 = vector.load %arg11[%c56, %c0_41] : memref<64x128xf32, #tpu.memory_space<vmem>>, vector<8x128xf32>
    tpu.vector_store %arg11[%c56, %c0_41], %52 {strides = array<i32>} : memref<64x128xf32, #tpu.memory_space<vmem>>, vector<8x128xf32>,
    %c0_42 = arith.constant 0 : index
    %c0_43 = arith.constant 0 : index
    %c0_44 = arith.constant 0 : index
    %54 = vector.load %arg9[%c0_42, %c0_43, %c0_44] : memref<2x8x128xf32, #tpu.memory_space<vmem>>, vector<1x8x128xf32>
    %55 = vector.shape_cast %54 : vector<1x8x128xf32> to vector<8x128xf32>
    %56 = vector.shape_cast %52 : vector<8x128xf32> to vector<1x8x128xf32>
    tpu.vector_store %arg9[%c0_42, %c0_43, %c0_44], %56 {strides = array<i32>} : memref<2x8x128xf32, #tpu.memory_space<vmem>>, vector<1x8x128xf32>,
    %c0_45 = arith.constant 0 : index
    %c0_46 = arith.constant 0 : index
    %57 = vector.load %arg11[%c0_45, %c0_46] : memref<64x128xf32, #tpu.memory_space<vmem>>, vector<64x128xf32>
    %c1_47 = arith.constant 1 : index
    %c0_48 = arith.constant 0 : index
    %c0_49 = arith.constant 0 : index
    %58 = vector.load %arg3[%c1_47, %c0_48, %c0_49] : memref<2x128x128xf32, #tpu.memory_space<vmem>>, vector<1x128x128xf32>
    %59 = vector.shape_cast %58 : vector<1x128x128xf32> to vector<128x128xf32>
    %cst_50 = arith.constant dense<0.000000e+00> : vector<64x128xf32>
    %60 = tpu.matmul %57, %59, %cst_50 {dimension_numbers = #tpu.dot_dimension_numbers<[1], [0], [0], [1], [0, 0, 1, 1], [], []>} : vector<64x128xf32>, vector<128x128xf32>, vector<64x128xf32> -> vector<64x128xf32>
    %c1_51 = arith.constant 1 : index
    %c0_52 = arith.constant 0 : index
    %c0_53 = arith.constant 0 : index
    %61 = vector.load %arg5[%c1_51, %c0_52, %c0_53] : memref<2x1x128xf32, #tpu.memory_space<vmem>>, vector<1x1x128xf32>
    %62 = vector.shape_cast %61 : vector<1x1x128xf32> to vector<1x128xf32>
    %63 = vector.broadcast %62 : vector<1x128xf32> to vector<64x128xf32>
    %64 = arith.addf %60, %63 : vector<64x128xf32>
    %c0_54 = arith.constant 0 : index
    %c0_55 = arith.constant 0 : index
    %65 = vector.load %arg11[%c0_54, %c0_55] : memref<64x128xf32, #tpu.memory_space<vmem>>, vector<64x128xf32>
    tpu.vector_store %arg11[%c0_54, %c0_55], %64 {strides = array<i32>} : memref<64x128xf32, #tpu.memory_space<vmem>>, vector<64x128xf32>,
    %c1_56 = arith.constant 1 : index
    %c0_57 = arith.constant 0 : index
    %c0_58 = arith.constant 0 : index
    %66 = vector.load %arg4[%c1_56, %c0_57, %c0_58] : memref<2x128x128xf32, #tpu.memory_space<vmem>>, vector<1x128x128xf32>
    %67 = vector.shape_cast %66 : vector<1x128x128xf32> to vector<128x128xf32>
    %c1_59 = arith.constant 1 : index
    %c0_60 = arith.constant 0 : index
    %c0_61 = arith.constant 0 : index
    %68 = vector.load %arg2[%c1_59, %c0_60, %c0_61] : memref<2x8x128xf32, #tpu.memory_space<vmem>>, vector<1x8x128xf32>
    %69 = vector.shape_cast %68 : vector<1x8x128xf32> to vector<8x128xf32>
    %c0_62 = arith.constant 0 : index
    %c0_63 = arith.constant 0 : index
    %70 = vector.load %arg11[%c0_62, %c0_63] : memref<64x128xf32, #tpu.memory_space<vmem>>, vector<8x128xf32>
    %cst_64 = arith.constant dense<0.000000e+00> : vector<8x128xf32>
    %71 = tpu.matmul %69, %67, %cst_64 {dimension_numbers = #tpu.dot_dimension_numbers<[1], [0], [0], [1], [0, 0, 1, 1], [], []>} : vector<8x128xf32>, vector<128x128xf32>, vector<8x128xf32> -> vector<8x128xf32>
    %72 = arith.addf %70, %71 : vector<8x128xf32>
    %73 = math.tanh %72 : vector<8x128xf32>
    %c8_65 = arith.constant 8 : index
    %c0_66 = arith.constant 0 : index
    %74 = vector.load %arg11[%c8_65, %c0_66] : memref<64x128xf32, #tpu.memory_space<vmem>>, vector<8x128xf32>
    %cst_67 = arith.constant dense<0.000000e+00> : vector<8x128xf32>
    %75 = tpu.matmul %73, %67, %cst_67 {dimension_numbers = #tpu.dot_dimension_numbers<[1], [0], [0], [1], [0, 0, 1, 1], [], []>} : vector<8x128xf32>, vector<128x128xf32>, vector<8x128xf32> -> vector<8x128xf32>
    %76 = arith.addf %74, %75 : vector<8x128xf32>
    %77 = math.tanh %76 : vector<8x128xf32>
    %c16_68 = arith.constant 16 : index
    %c0_69 = arith.constant 0 : index
    %78 = vector.load %arg11[%c16_68, %c0_69] : memref<64x128xf32, #tpu.memory_space<vmem>>, vector<8x128xf32>
    %cst_70 = arith.constant dense<0.000000e+00> : vector<8x128xf32>
    %79 = tpu.matmul %77, %67, %cst_70 {dimension_numbers = #tpu.dot_dimension_numbers<[1], [0], [0], [1], [0, 0, 1, 1], [], []>} : vector<8x128xf32>, vector<128x128xf32>, vector<8x128xf32> -> vector<8x128xf32>
    %80 = arith.addf %78, %79 : vector<8x128xf32>
    %81 = math.tanh %80 : vector<8x128xf32>
    %c24_71 = arith.constant 24 : index
    %c0_72 = arith.constant 0 : index
    %82 = vector.load %arg11[%c24_71, %c0_72] : memref<64x128xf32, #tpu.memory_space<vmem>>, vector<8x128xf32>
    %cst_73 = arith.constant dense<0.000000e+00> : vector<8x128xf32>
    %83 = tpu.matmul %81, %67, %cst_73 {dimension_numbers = #tpu.dot_dimension_numbers<[1], [0], [0], [1], [0, 0, 1, 1], [], []>} : vector<8x128xf32>, vector<128x128xf32>, vector<8x128xf32> -> vector<8x128xf32>
    %84 = arith.addf %82, %83 : vector<8x128xf32>
    %85 = math.tanh %84 : vector<8x128xf32>
    %c32_74 = arith.constant 32 : index
    %c0_75 = arith.constant 0 : index
    %86 = vector.load %arg11[%c32_74, %c0_75] : memref<64x128xf32, #tpu.memory_space<vmem>>, vector<8x128xf32>
    %cst_76 = arith.constant dense<0.000000e+00> : vector<8x128xf32>
    %87 = tpu.matmul %85, %67, %cst_76 {dimension_numbers = #tpu.dot_dimension_numbers<[1], [0], [0], [1], [0, 0, 1, 1], [], []>} : vector<8x128xf32>, vector<128x128xf32>, vector<8x128xf32> -> vector<8x128xf32>
    %88 = arith.addf %86, %87 : vector<8x128xf32>
    %89 = math.tanh %88 : vector<8x128xf32>
    %c40_77 = arith.constant 40 : index
    %c0_78 = arith.constant 0 : index
    %90 = vector.load %arg11[%c40_77, %c0_78] : memref<64x128xf32, #tpu.memory_space<vmem>>, vector<8x128xf32>
    %cst_79 = arith.constant dense<0.000000e+00> : vector<8x128xf32>
    %91 = tpu.matmul %89, %67, %cst_79 {dimension_numbers = #tpu.dot_dimension_numbers<[1], [0], [0], [1], [0, 0, 1, 1], [], []>} : vector<8x128xf32>, vector<128x128xf32>, vector<8x128xf32> -> vector<8x128xf32>
    %92 = arith.addf %90, %91 : vector<8x128xf32>
    %93 = math.tanh %92 : vector<8x128xf32>
    %c48_80 = arith.constant 48 : index
    %c0_81 = arith.constant 0 : index
    %94 = vector.load %arg11[%c48_80, %c0_81] : memref<64x128xf32, #tpu.memory_space<vmem>>, vector<8x128xf32>
    %cst_82 = arith.constant dense<0.000000e+00> : vector<8x128xf32>
    %95 = tpu.matmul %93, %67, %cst_82 {dimension_numbers = #tpu.dot_dimension_numbers<[1], [0], [0], [1], [0, 0, 1, 1], [], []>} : vector<8x128xf32>, vector<128x128xf32>, vector<8x128xf32> -> vector<8x128xf32>
    %96 = arith.addf %94, %95 : vector<8x128xf32>
    %97 = math.tanh %96 : vector<8x128xf32>
    %c56_83 = arith.constant 56 : index
    %c0_84 = arith.constant 0 : index
    %98 = vector.load %arg11[%c56_83, %c0_84] : memref<64x128xf32, #tpu.memory_space<vmem>>, vector<8x128xf32>
    %cst_85 = arith.constant dense<0.000000e+00> : vector<8x128xf32>
    %99 = tpu.matmul %97, %67, %cst_85 {dimension_numbers = #tpu.dot_dimension_numbers<[1], [0], [0], [1], [0, 0, 1, 1], [], []>} : vector<8x128xf32>, vector<128x128xf32>, vector<8x128xf32> -> vector<8x128xf32>
    %100 = arith.addf %98, %99 : vector<8x128xf32>
    %101 = math.tanh %100 : vector<8x128xf32>
    %c1_86 = arith.constant 1 : index
    %c0_87 = arith.constant 0 : index
    %c0_88 = arith.constant 0 : index
    %102 = vector.load %arg9[%c1_86, %c0_87, %c0_88] : memref<2x8x128xf32, #tpu.memory_space<vmem>>, vector<1x8x128xf32>
    %103 = vector.shape_cast %102 : vector<1x8x128xf32> to vector<8x128xf32>
    %104 = vector.shape_cast %101 : vector<8x128xf32> to vector<1x8x128xf32>
    tpu.vector_store %arg9[%c1_86, %c0_87, %c0_88], %104 {strides = array<i32>} : memref<2x8x128xf32, #tpu.memory_space<vmem>>, vector<1x8x128xf32>,
    %c0_89 = arith.constant 0 : index
    %c0_90 = arith.constant 0 : index
    %105 = vector.load %arg6[%c0_89, %c0_90] : memref<128x128xf32, #tpu.memory_space<vmem>>, vector<128x128xf32>
    %cst_91 = arith.constant dense<0.000000e+00> : vector<8x128xf32>
    %106 = tpu.matmul %101, %105, %cst_91 {dimension_numbers = #tpu.dot_dimension_numbers<[1], [0], [0], [1], [0, 0, 1, 1], [], []>} : vector<8x128xf32>, vector<128x128xf32>, vector<8x128xf32> -> vector<8x128xf32>
    %c0_92 = arith.constant 0 : index
    %c0_93 = arith.constant 0 : index
    %107 = vector.load %arg7[%c0_92, %c0_93] : memref<1x128xf32, #tpu.memory_space<vmem>>, vector<1x128xf32>
    %108 = vector.broadcast %107 : vector<1x128xf32> to vector<8x128xf32>
    %109 = arith.addf %106, %108 : vector<8x128xf32>
    %c0_94 = arith.constant 0 : index
    %c0_95 = arith.constant 0 : index
    %110 = vector.load %arg8[%c0_94, %c0_95] : memref<8x128xf32, #tpu.memory_space<vmem>>, vector<8x128xf32>
    tpu.vector_store %arg8[%c0_94, %c0_95], %109 {strides = array<i32>} : memref<8x128xf32, #tpu.memory_space<vmem>>, vector<8x128xf32>,
    return
  }
  func.func @transform_0(%arg0: i32) -> (i32, i32, i32) {
    %c0_i32 = arith.constant 0 : i32
    %c0_i32_0 = arith.constant 0 : i32
    %c0_i32_1 = arith.constant 0 : i32
    return %arg0, %c0_i32, %c0_i32_0 : i32, i32, i32
  }
  func.func @transform_1(%arg0: i32) -> (i32, i32, i32) {
    %c0_i32 = arith.constant 0 : i32
    %c0_i32_0 = arith.constant 0 : i32
    %c0_i32_1 = arith.constant 0 : i32
    return %c0_i32, %arg0, %c0_i32_0 : i32, i32, i32
  }
  func.func @transform_2(%arg0: i32) -> (i32, i32, i32) {
    %c0_i32 = arith.constant 0 : i32
    %c0_i32_0 = arith.constant 0 : i32
    %c0_i32_1 = arith.constant 0 : i32
    %c0_i32_2 = arith.constant 0 : i32
    return %c0_i32, %c0_i32_0, %c0_i32_1 : i32, i32, i32
  }
  func.func @transform_3(%arg0: i32) -> (i32, i32, i32) {
    %c0_i32 = arith.constant 0 : i32
    %c0_i32_0 = arith.constant 0 : i32
    %c0_i32_1 = arith.constant 0 : i32
    %c0_i32_2 = arith.constant 0 : i32
    return %c0_i32, %c0_i32_0, %c0_i32_1 : i32, i32, i32
  }
  func.func @transform_4(%arg0: i32) -> (i32, i32, i32) {
    %c0_i32 = arith.constant 0 : i32
    %c0_i32_0 = arith.constant 0 : i32
    %c0_i32_1 = arith.constant 0 : i32
    %c0_i32_2 = arith.constant 0 : i32
    return %c0_i32, %c0_i32_0, %c0_i32_1 : i32, i32, i32
  }
  func.func @transform_5(%arg0: i32) -> (i32, i32) {
    %c0_i32 = arith.constant 0 : i32
    %c0_i32_0 = arith.constant 0 : i32
    %c0_i32_1 = arith.constant 0 : i32
    return %c0_i32, %c0_i32_0 : i32, i32
  }
  func.func @transform_6(%arg0: i32) -> (i32, i32) {
    %c0_i32 = arith.constant 0 : i32
    %c0_i32_0 = arith.constant 0 : i32
    %c0_i32_1 = arith.constant 0 : i32
    return %c0_i32, %c0_i32_0 : i32, i32
  }
  func.func @transform_7(%arg0: i32) -> (i32, i32) {
    %c0_i32 = arith.constant 0 : i32
    %c0_i32_0 = arith.constant 0 : i32
    return %arg0, %c0_i32 : i32, i32
  }
  func.func @transform_8(%arg0: i32) -> (i32, i32, i32) {
    %c0_i32 = arith.constant 0 : i32
    %c0_i32_0 = arith.constant 0 : i32
    %c0_i32_1 = arith.constant 0 : i32
    return %c0_i32, %arg0, %c0_i32_0 : i32, i32, i32
  }
}

</mosaic_0001>

<bundles_post_ra>
// kernel: tpu_custom_call.1
= control target key start
LH: loop header
LB: loop body
LE: loop exit
PB: predicated region body
PF: predicated region fallthrough
CT: control target
= control target key end

     0   :  { %14 = vsyncpa [#allocation5], 0  ;;  %s1474_s0 = inlined_call_operand.hbm [shape: f32[8,8,16], index: 0, kind: input, shape index: {}]   ;;  %s1475_s1 = inlined_call_operand.hbm [shape: f32[2,8,128], index: 1, kind: input, shape index: {}]   ;;  %s1476_s2 = inlined_call_operand.hbm [shape: f32[2,128,128], index: 2, kind: input, shape index: {}]   ;;  %s1477_s3 = inlined_call_operand.hbm [shape: f32[2,128,128], index: 3, kind: input, shape index: {}]   ;;  %s1478_s4 = inlined_call_operand.vmem [shape: f32[2,1,128], index: 4, kind: input, shape index: {}]   ;;  %s1479_s5 = inlined_call_operand.hbm [shape: f32[128,128], index: 5, kind: input, shape index: {}]   ;;  %s1480_s6 = inlined_call_operand.vmem [shape: f32[1,128], index: 6, kind: input, shape index: {}]   ;;  %s1481_s7 = inlined_call_operand.hbm [shape: f32[8,128], index: 7, kind: output, shape index: {0}]   ;;  %s1482_s8 = inlined_call_operand.hbm [shape: f32[2,8,128], index: 8, kind: output, shape index: {1}]  }
   0x1   :  { %15 = vsyncpa [#allocation8], 0 }
   0x2   :  { %16 = vsyncpa [#allocation11], 0 }
   0x3   :  { %17 = vsyncpa [#allocation6], 0 }
   0x4   :  { %18 = vsyncpa [#allocation15], 0  ;;  %s36_s29 = sshll.u32 %s1475_s1, 4  ;;  %s1022_s30 = smov [#allocation7]   ;;  %s37_s29 = int_to_ptr.hbm [resolvable:$true] %s36_s29 }
   0x5   :  { %s38_s9 = sshll.u32 %s1022_s30, 4  ;;  %s62_s12 = sshll.u32 %s1477_s3, 4  ;;  %s39_s9 = int_to_ptr.vmem [resolvable:$true] %s38_s9  ;;  %s63_s12 = int_to_ptr.hbm [resolvable:$true] %s62_s12 }
   0x6   :  { %s1023_s13 = smov 128   ;;  %s1024_s14 = smov 8  }
   0x7   :  { %44 = dma.hbm_to_vmem [thread:$0]  %s37_s29, 256, %s39_s9, [#allocation8], %s1023_s13, %s1023_s13, %s1024_s14  }
   0x8   :  { %s1025_s15 = smov [#allocation10]   ;;  %s23_s1 = sshll.u32 %s1474_s0, 4  ;;  %s24_s1 = int_to_ptr.hbm [resolvable:$true] %s23_s1 }
   0x9   :  { %s64_s16 = sshll.u32 %s1025_s15, 4  ;;  %s49_s20 = sshll.u32 %s1476_s2, 4  ;;  %s65_s16 = int_to_ptr.vmem [resolvable:$true] %s64_s16  ;;  %s50_s20 = int_to_ptr.hbm [resolvable:$true] %s49_s20 }
   0xa   :  { %70 = dma.hbm_to_vmem [thread:$0]  %s63_s12, 4096, %s65_s16, [#allocation11], %s1023_s13, %s1023_s13, %s1024_s14  }
   0xb   :  { %s1026_s21 = smov [#allocation4]   ;;  %s1027_s23 = smov [#allocation9]  }
   0xc   :  { %s25_s22 = sshll.u32 %s1026_s21, 4  ;;  %s51_s0 = sshll.u32 %s1027_s23, 4  ;;  %s26_s22 = int_to_ptr.vmem [resolvable:$true] %s25_s22  ;;  %s52_s0 = int_to_ptr.vmem [resolvable:$true] %s51_s0 }
   0xd   :  { %31 = dma.hbm_to_vmem [thread:$0]  %s24_s1, 1024, %s26_s22, [#allocation5], %s1023_s13, %s1023_s13, %s1024_s14  }
   0xe   :  { %s77_s26 = sshll.u32 %s1479_s5, 4  ;;  %s1028_s2 = smov [#allocation12]   ;;  %s78_s26 = int_to_ptr.hbm [resolvable:$true] %s77_s26 }
   0xf   :  { %57 = dma.hbm_to_vmem [thread:$0]  %s50_s20, 4096, %s52_s0, [#allocation8], %s1023_s13, %s1023_s13, %s1024_s14  }
  0x10   :  { %s79_s27 = sshll.u32 %s1028_s2, 4  ;;  %s80_s27 = int_to_ptr.vmem [resolvable:$true] %s79_s27 }
  0x11   :  { %85 = dma.hbm_to_vmem [thread:$0]  %s78_s26, 2048, %s80_s27, [#allocation11], %s1023_s13, %s1023_s13, %s1024_s14  }
  0x12   :  { %1012 = dma.done.wait [#allocation5], 1024  }
  0x13   :  { %1013 = vsyncadd [#allocation5], 4294966272 }
  0x14   :  { %1014 = dma.done.wait [#allocation8], 4352  }
  0x15   :  { %1015 = vsyncadd [#allocation8], 4294962944 }
  0x16   :  { %1016 = dma.done.wait [#allocation11], 6144  }
  0x17   :  { %1017 = vsyncadd [#allocation11], 4294961152  ;;  %v117_v0 = vld [vmem:[#allocation9 + $0x8] sm:$0xff]  ;;  %v116_v1 = vld [vmem:[#allocation9] sm:$0xff]  ;;  %vm122_vm0 = vcmask 130048   ;;  %s771_s12 = sshll.u32 %s1482_s8, 4  ;;  %s772_s12 = int_to_ptr.hbm [resolvable:$true] %s771_s12 }
  0x18   :  { %161 = vmatpush.msra.mxu0 %v117_v0  ;;  %v108_v2 = vld [vmem:[#allocation4] sm:$0xff]  ;;  %v1107_v3 = vld [vmem:[#allocation10 + $0x78] sm:$0xff]  ;;  %v1120_v6 = vld [vmem:[#allocation10 + $0x68] sm:$0xff]  ;;  %s1030_s17 = smov [#allocation13]   ;;  %s761_s19 = sshll.u32 %s1481_s7, 4  ;;  %s762_s19 = int_to_ptr.hbm [resolvable:$true] %s761_s19 }
  0x19   :  { %v1109_v4 = vld [vmem:[#allocation10 + $0x70] sm:$0xff]  ;;  %216 = vmatpush.msra.mxu1 %v1107_v3  ;;  %243 = vmatpush.msra.mxu2 %v1107_v3  ;;  %v109_v5 = vld [vmem:[#allocation4 + $0x8] sm:$0xff]  ;;  %v1122_v7 = vld [vmem:[#allocation10 + $0x60] sm:$0xff]  ;;  %s759_s18 = sshll.u32 %s1030_s17, 4  ;;  %s760_s18 = int_to_ptr.vmem [resolvable:$true] %s759_s18 }
  0x1a   :  { %162 = vmatpush.msra.mxu0 %v116_v1  ;;  %270 = vmatpush.msra.mxu3 %v1107_v3  ;;  %v1126_v8 = vld [vmem:[#allocation10 + $0x58] sm:$0xff]  ;;  %v1132_v9 = vld [vmem:[#allocation10 + $0x50] sm:$0xff]  ;;  %v110_v10 = vld [vmem:[#allocation4 + $0x10] sm:$0xff] }
  0x1b   :  { %791 = vmatmul.msk.f32.vlgmr.msra.gmra.mxu0 %vm122_vm0, %v108_v2  ;;  %217 = vmatpush.msra.mxu1 %v1109_v4  ;;  %v1143_v11 = vld [vmem:[#allocation10 + $0x48] sm:$0xff]  ;;  %v1145_v12 = vld [vmem:[#allocation10 + $0x40] sm:$0xff]  ;;  %v1150_v13 = vld [vmem:[#allocation10 + $0x38] sm:$0xff] }
  0x1c   :  { %378 = vmatpush.msrb.mxu0 %v1107_v3  ;;  %244 = vmatpush.msra.mxu2 %v1109_v4  ;;  %v1156_v14 = vld [vmem:[#allocation10 + $0x30] sm:$0xff]  ;;  %v111_v15 = vld [vmem:[#allocation4 + $0x18] sm:$0xff]  ;;  %v1169_v17 = vld [vmem:[#allocation10 + $0x20] sm:$0xff] }
  0x1d   :  { %271 = vmatpush.msra.mxu3 %v1109_v4  ;;  %218 = vmatpush.msra.mxu1 %v1120_v6  ;;  %v1167_v16 = vld [vmem:[#allocation10 + $0x28] sm:$0xff]  ;;  %v1174_v18 = vld [vmem:[#allocation10 + $0x18] sm:$0xff]  ;;  %v1180_v19 = vld [vmem:[#allocation10 + $0x10] sm:$0xff] }
  0x1e   :  { %379 = vmatpush.msrb.mxu0 %v1109_v4  ;;  %245 = vmatpush.msra.mxu2 %v1120_v6  ;;  %v112_v20 = vld [vmem:[#allocation4 + $0x20] sm:$0xff]  ;;  %v1186_v21 = vld [vmem:[#allocation10 + $0x8] sm:$0xff]  ;;  %v1193_v22 = vld [vmem:[#allocation10] sm:$0xff] }
  0x1f   :  { %272 = vmatpush.msra.mxu3 %v1120_v6  ;;  %219 = vmatpush.msra.mxu1 %v1122_v7  ;;  %v212_v23 = vld [vmem:[#allocation7] sm:$0xff]  ;;  %v113_v24 = vld [vmem:[#allocation4 + $0x28] sm:$0xff]  ;;  %v114_v25 = vld [vmem:[#allocation4 + $0x30] sm:$0xff] }
  0x20   :  { %380 = vmatpush.msrb.mxu0 %v1120_v6  ;;  %246 = vmatpush.msra.mxu2 %v1122_v7  ;;  %v115_v26 = vld [vmem:[#allocation4 + $0x38] sm:$0xff]  ;;  %v809_v27 = vld [vmem:[%s1478_s4] ss:$0 sm:$0xff]  ;;  %v453_v56 = vld [vmem:[#allocation9 + $0xf8] sm:$0xff] }
  0x21   :  { %273 = vmatpush.msra.mxu3 %v1122_v7  ;;  %220 = vmatpush.msra.mxu1 %v1126_v8  ;;  %v452_v57 = vld [vmem:[#allocation9 + $0xf0] sm:$0xff]  ;;  %v451_v58 = vld [vmem:[#allocation9 + $0xe8] sm:$0xff]  ;;  %v450_v59 = vld [vmem:[#allocation9 + $0xe0] sm:$0xff] }
  0x22   :  { %381 = vmatpush.msrb.mxu0 %v1122_v7  ;;  %247 = vmatpush.msra.mxu2 %v1126_v8  ;;  %v449_v60 = vld [vmem:[#allocation9 + $0xd8] sm:$0xff]  ;;  %v448_v61 = vld [vmem:[#allocation9 + $0xd0] sm:$0xff]  ;;  %v447_v62 = vld [vmem:[#allocation9 + $0xc8] sm:$0xff] }
  0x23   :  { %792 = vmatmul.msk.f32.gmra.mxu0 %vm122_vm0, %v109_v5  ;;  %274 = vmatpush.msra.mxu3 %v1126_v8  ;;  %v446_v5 = vld [vmem:[#allocation9 + $0xc0] sm:$0xff] }
  0x24   :  { %382 = vmatpush.msrb.mxu0 %v1126_v8  ;;  %221 = vmatpush.msra.mxu1 %v1132_v9 }
  0x25   :  { %248 = vmatpush.msra.mxu2 %v1132_v9  ;;  %275 = vmatpush.msra.mxu3 %v1132_v9 }
  0x26   :  { %222 = vmatpush.msra.mxu1 %v1143_v11  ;;  %383 = vmatpush.msrb.mxu0 %v1132_v9 }
  0x27   :  { %249 = vmatpush.msra.mxu2 %v1143_v11  ;;  %276 = vmatpush.msra.mxu3 %v1143_v11 }
  0x28   :  { %223 = vmatpush.msra.mxu1 %v1145_v12  ;;  %384 = vmatpush.msrb.mxu0 %v1143_v11 }
  0x29   :  { %250 = vmatpush.msra.mxu2 %v1145_v12  ;;  %277 = vmatpush.msra.mxu3 %v1145_v12 }
  0x2a   :  { %224 = vmatpush.msra.mxu1 %v1150_v13  ;;  %385 = vmatpush.msrb.mxu0 %v1145_v12 }
  0x2b   :  { %793 = vmatmul.msk.f32.gmra.mxu0 %vm122_vm0, %v110_v10  ;;  %251 = vmatpush.msra.mxu2 %v1150_v13  ;;  %v441_v10 = vld [vmem:[#allocation9 + $0x98] sm:$0xff] }
  0x2c   :  { %278 = vmatpush.msra.mxu3 %v1150_v13  ;;  %225 = vmatpush.msra.mxu1 %v1156_v14 }
  0x2d   :  { %252 = vmatpush.msra.mxu2 %v1156_v14  ;;  %386 = vmatpush.msrb.mxu0 %v1150_v13 }
  0x2e   :  { %279 = vmatpush.msra.mxu3 %v1156_v14  ;;  %226 = vmatpush.msra.mxu1 %v1167_v16 }
  0x2f   :  { %253 = vmatpush.msra.mxu2 %v1167_v16  ;;  %387 = vmatpush.msrb.mxu0 %v1156_v14 }
  0x30   :  { %280 = vmatpush.msra.mxu3 %v1167_v16  ;;  %227 = vmatpush.msra.mxu1 %v1169_v17 }
  0x31   :  { %254 = vmatpush.msra.mxu2 %v1169_v17  ;;  %388 = vmatpush.msrb.mxu0 %v1167_v16 }
  0x32   :  { %281 = vmatpush.msra.mxu3 %v1169_v17  ;;  %228 = vmatpush.msra.mxu1 %v1174_v18 }
  0x33   :  { %794 = vmatmul.msk.f32.gmra.mxu0 %vm122_vm0, %v111_v15  ;;  %255 = vmatpush.msra.mxu2 %v1174_v18 }
  0x34   :  { %282 = vmatpush.msra.mxu3 %v1174_v18  ;;  %229 = vmatpush.msra.mxu1 %v1180_v19 }
  0x35   :  { %256 = vmatpush.msra.mxu2 %v1180_v19  ;;  %389 = vmatpush.msrb.mxu0 %v1169_v17 }
  0x36   :  { %283 = vmatpush.msra.mxu3 %v1180_v19  ;;  %230 = vmatpush.msra.mxu1 %v1186_v21 }
  0x37   :  { %257 = vmatpush.msra.mxu2 %v1186_v21  ;;  %390 = vmatpush.msrb.mxu0 %v1174_v18 }
  0x38   :  { %284 = vmatpush.msra.mxu3 %v1186_v21  ;;  %231 = vmatpush.msra.mxu1 %v1193_v22 }
  0x39   :  { %258 = vmatpush.msra.mxu2 %v1193_v22  ;;  %232 = vmatmul.f32.vlgmr.msra.gmra.mxu1 %v212_v23  ;;  %v1298_v23 = vld [vmem:[#allocation10 + $0xe0] sm:$0xff] }
  0x3a   :  { %285 = vmatpush.msra.mxu3 %v1193_v22  ;;  %297 = vmatpush.msrb.mxu1 %v1107_v3 }
  0x3b   :  { %795 = vmatmul.msk.f32.gmra.mxu0 %vm122_vm0, %v112_v20  ;;  %324 = vmatpush.msrb.mxu2 %v1107_v3  ;;  %v1286_v20 = vld [vmem:[#allocation10 + $0xf8] sm:$0xff] }
  0x3c   :  { %351 = vmatpush.msrb.mxu3 %v1107_v3  ;;  %298 = vmatpush.msrb.mxu1 %v1109_v4 }
  0x3d   :  { %325 = vmatpush.msrb.mxu2 %v1109_v4  ;;  %391 = vmatpush.msrb.mxu0 %v1180_v19 }
  0x3e   :  { %352 = vmatpush.msrb.mxu3 %v1109_v4  ;;  %299 = vmatpush.msrb.mxu1 %v1120_v6 }
  0x3f   :  { %326 = vmatpush.msrb.mxu2 %v1120_v6  ;;  %392 = vmatpush.msrb.mxu0 %v1186_v21 }
  0x40   :  { %353 = vmatpush.msrb.mxu3 %v1120_v6  ;;  %300 = vmatpush.msrb.mxu1 %v1122_v7 }
  0x41   :  { %327 = vmatpush.msrb.mxu2 %v1122_v7  ;;  %393 = vmatpush.msrb.mxu0 %v1193_v22 }
  0x42   :  { %354 = vmatpush.msrb.mxu3 %v1122_v7  ;;  %301 = vmatpush.msrb.mxu1 %v1126_v8 }
  0x43   :  { %796 = vmatmul.msk.f32.gmra.mxu0 %vm122_vm0, %v113_v24  ;;  %328 = vmatpush.msrb.mxu2 %v1126_v8  ;;  %v1304_v24 = vld [vmem:[#allocation10 + $0xd8] sm:$0xff] }
  0x44   :  { %355 = vmatpush.msrb.mxu3 %v1126_v8  ;;  %302 = vmatpush.msrb.mxu1 %v1132_v9 }
  0x45   :  { %329 = vmatpush.msrb.mxu2 %v1132_v9  ;;  %551 = vmatpush.msra.mxu0 %v1286_v20 }
  0x46   :  { %356 = vmatpush.msrb.mxu3 %v1132_v9  ;;  %303 = vmatpush.msrb.mxu1 %v1143_v11 }
  0x47   :  { %330 = vmatpush.msrb.mxu2 %v1143_v11 }
  0x48   :  { %357 = vmatpush.msrb.mxu3 %v1143_v11  ;;  %304 = vmatpush.msrb.mxu1 %v1145_v12 }
  0x49   :  { %331 = vmatpush.msrb.mxu2 %v1145_v12 }
  0x4a   :  { %358 = vmatpush.msrb.mxu3 %v1145_v12  ;;  %305 = vmatpush.msrb.mxu1 %v1150_v13 }
  0x4b   :  { %797 = vmatmul.msk.f32.gmra.mxu0 %vm122_vm0, %v114_v25  ;;  %332 = vmatpush.msrb.mxu2 %v1150_v13  ;;  %v1311_v25 = vld [vmem:[#allocation10 + $0xd0] sm:$0xff] }
  0x4c   :  { %359 = vmatpush.msrb.mxu3 %v1150_v13  ;;  %306 = vmatpush.msrb.mxu1 %v1156_v14 }
  0x4d   :  { %333 = vmatpush.msrb.mxu2 %v1156_v14 }
  0x4e   :  { %360 = vmatpush.msrb.mxu3 %v1156_v14  ;;  %307 = vmatpush.msrb.mxu1 %v1167_v16 }
  0x4f   :  { %334 = vmatpush.msrb.mxu2 %v1167_v16 }
  0x50   :  { %361 = vmatpush.msrb.mxu3 %v1167_v16  ;;  %308 = vmatpush.msrb.mxu1 %v1169_v17 }
  0x51   :  { %335 = vmatpush.msrb.mxu2 %v1169_v17 }
  0x52   :  { %362 = vmatpush.msrb.mxu3 %v1169_v17  ;;  %309 = vmatpush.msrb.mxu1 %v1174_v18 }
  0x53   :  { %798 = vmatmul.msk.f32.gmra.mxu0 %vm122_vm0, %v115_v26  ;;  %336 = vmatpush.msrb.mxu2 %v1174_v18  ;;  %v1316_v26 = vld [vmem:[#allocation10 + $0xc8] sm:$0xff] }
  0x54   :  { %363 = vmatpush.msrb.mxu3 %v1174_v18  ;;  %310 = vmatpush.msrb.mxu1 %v1180_v19 }
  0x55   :  { %337 = vmatpush.msrb.mxu2 %v1180_v19 }
  0x56   :  { %364 = vmatpush.msrb.mxu3 %v1180_v19  ;;  %311 = vmatpush.msrb.mxu1 %v1186_v21 }
  0x57   :  { %338 = vmatpush.msrb.mxu2 %v1186_v21 }
  0x58   :  { %365 = vmatpush.msrb.mxu3 %v1186_v21  ;;  %312 = vmatpush.msrb.mxu1 %v1193_v22 }
  0x59   :  { %339 = vmatpush.msrb.mxu2 %v1193_v22 }
  0x5a   :  { %366 = vmatpush.msrb.mxu3 %v1193_v22  ;;  %405 = vmatpush.msra.mxu1 %v1107_v3 }
  0x5c   :  { %406 = vmatpush.msra.mxu1 %v1109_v4 }
  0x5e   :  { %407 = vmatpush.msra.mxu1 %v1120_v6  ;;  %v445_v6 = vld [vmem:[#allocation9 + $0xb8] sm:$0xff] }
  0x60   :  { %408 = vmatpush.msra.mxu1 %v1122_v7  ;;  %v444_v7 = vld [vmem:[#allocation9 + $0xb0] sm:$0xff] }
  0x62   :  { %409 = vmatpush.msra.mxu1 %v1126_v8  ;;  %v443_v8 = vld [vmem:[#allocation9 + $0xa8] sm:$0xff] }
  0x64   :  { %410 = vmatpush.msra.mxu1 %v1132_v9  ;;  %v442_v9 = vld [vmem:[#allocation9 + $0xa0] sm:$0xff] }
  0x66   :  { %411 = vmatpush.msra.mxu1 %v1143_v11  ;;  %v440_v11 = vld [vmem:[#allocation9 + $0x90] sm:$0xff] }
  0x68   :  { %412 = vmatpush.msra.mxu1 %v1145_v12  ;;  %v439_v12 = vld [vmem:[#allocation9 + $0x88] sm:$0xff] }
  0x6a   :  { %413 = vmatpush.msra.mxu1 %v1150_v13  ;;  %v438_v13 = vld [vmem:[#allocation9 + $0x80] sm:$0xff] }
  0x6c   :  { %414 = vmatpush.msra.mxu1 %v1156_v14 }
  0x6e   :  { %415 = vmatpush.msra.mxu1 %v1167_v16 }
  0x70   :  { %416 = vmatpush.msra.mxu1 %v1169_v17 }
  0x72   :  { %417 = vmatpush.msra.mxu1 %v1174_v18 }
  0x74   :  { %418 = vmatpush.msra.mxu1 %v1180_v19 }
  0x76   :  { %419 = vmatpush.msra.mxu1 %v1186_v21  ;;  %v1288_v21 = vld [vmem:[#allocation10 + $0xf0] sm:$0xff] }
  0x77   :  { %552 = vmatpush.msra.mxu0 %v1288_v21 }
  0x78   :  { %420 = vmatpush.msra.mxu1 %v1193_v22  ;;  %v1292_v22 = vld [vmem:[#allocation10 + $0xe8] sm:$0xff] }
  0x79   :  { %553 = vmatpush.msra.mxu0 %v1292_v22 }
  0x7b   :  { %554 = vmatpush.msra.mxu0 %v1298_v23 }
  0x7d   :  { %555 = vmatpush.msra.mxu0 %v1304_v24 }
  0x7f   :  { %556 = vmatpush.msra.mxu0 %v1311_v25 }
  0x81   :  { %557 = vmatpush.msra.mxu0 %v1316_v26 }
  0x98   :  { %v164_v28 = vpop.f32.mrf.mxu0 }
  0x99   :  { %v165_v29 = vadd.f32 %v809_v27, %v164_v28  ;;  %v1334_v28 = vld [vmem:[#allocation10 + $0xb8] sm:$0xff] }
  0x9b   :  { %188 = vst [vmem:[#allocation2] sm:$0xff] %v165_v29  ;;  %v1337_v29 = vld [vmem:[#allocation10 + $0xb0] sm:$0xff] }
  0xa0   :  { %v167_v30 = vpop.f32.mrf.mxu0 }
  0xa1   :  { %v168_v31 = vadd.f32 %v809_v27, %v167_v30  ;;  %v1343_v30 = vld [vmem:[#allocation10 + $0xa8] sm:$0xff] }
  0xa3   :  { %189 = vst [vmem:[#allocation2 + $0x8] sm:$0xff] %v168_v31  ;;  %v1352_v31 = vld [vmem:[#allocation10 + $0xa0] sm:$0xff] }
  0xa8   :  { %v170_v32 = vpop.f32.mrf.mxu0 }
  0xa9   :  { %v171_v33 = vadd.f32 %v809_v27, %v170_v32  ;;  %v1355_v32 = vld [vmem:[#allocation10 + $0x98] sm:$0xff] }
  0xab   :  { %190 = vst [vmem:[#allocation2 + $0x10] sm:$0xff] %v171_v33  ;;  %v1361_v33 = vld [vmem:[#allocation10 + $0x90] sm:$0xff] }
  0xb0   :  { %v173_v34 = vpop.f32.mrf.mxu0 }
  0xb1   :  { %v174_v35 = vadd.f32 %v809_v27, %v173_v34  ;;  %v1367_v34 = vld [vmem:[#allocation10 + $0x88] sm:$0xff] }
  0xb3   :  { %191 = vst [vmem:[#allocation2 + $0x18] sm:$0xff] %v174_v35  ;;  %v1376_v35 = vld [vmem:[#allocation10 + $0x80] sm:$0xff] }
  0xb6   :  { %v233_v46 = vpop.f32.mrf.mxu1 }
  0xb8   :  { %v176_v36 = vpop.f32.mrf.mxu0 }
  0xb9   :  { %v177_v37 = vadd.f32 %v809_v27, %v176_v36 }
  0xba   :  { %v213_v44 = vld [vmem:[#allocation2] ss:$8 sm:$0xf]  ;;  %v240_v51 = vld [vmem:[#allocation2 + $0x1] ss:$8 sm:$0xf] }
  0xbb   :  { %192 = vst [vmem:[#allocation2 + $0x20] sm:$0xff] %v177_v37  ;;  %v267_v0 = vld [vmem:[#allocation2 + $0x2] ss:$8 sm:$0xf] }
  0xbc   :  { %v294_v15 = vld [vmem:[#allocation2 + $0x3] ss:$8 sm:$0xf]  ;;  %v321_v37 = vld [vmem:[#allocation2 + $0x4] ss:$8 sm:$0xf] }
  0xc0   :  { %v179_v38 = vpop.f32.mrf.mxu0 }
  0xc1   :  { %v180_v39 = vadd.f32 %v809_v27, %v179_v38 }
  0xc3   :  { %193 = vst [vmem:[#allocation2 + $0x28] sm:$0xff] %v180_v39 }
  0xc8   :  { %v182_v40 = vpop.f32.mrf.mxu0 }
  0xc9   :  { %v183_v41 = vadd.f32 %v809_v27, %v182_v40 }
  0xcb   :  { %194 = vst [vmem:[#allocation2 + $0x30] sm:$0xff] %v183_v41 }
  0xd0   :  { %v185_v42 = vpop.f32.mrf.mxu0 }
  0xd1   :  { %v186_v43 = vadd.f32 %v809_v27, %v185_v42  ;;  %v1331_v27 = vld [vmem:[#allocation10 + $0xc0] sm:$0xff]  ;;  %v526_v42 = vld [vmem:[#allocation7 + $0x8] sm:$0xff] }
  0xd2   :  { %558 = vmatpush.msra.mxu0 %v1331_v27 }
  0xd3   :  { %195 = vst [vmem:[#allocation2 + $0x38] sm:$0xff] %v186_v43 }
  0xd4   :  { %559 = vmatpush.msra.mxu0 %v1334_v28 }
  0xd6   :  { %560 = vmatpush.msra.mxu0 %v1337_v29 }
  0xd8   :  { %561 = vmatpush.msra.mxu0 %v1343_v30 }
  0xda   :  { %v214_v45 = vld [vmem:[#allocation2] ss:$8 sm:$0xf0]  ;;  %v241_v50 = vld [vmem:[#allocation2 + $0x1] ss:$8 sm:$0xf0]  ;;  %562 = vmatpush.msra.mxu0 %v1352_v31 }
  0xdb   :  { %v215_v47 = vor.u32 %v214_v45, %v213_v44  ;;  %v242_v52 = vor.u32 %v241_v50, %v240_v51  ;;  %v268_v63 = vld [vmem:[#allocation2 + $0x2] ss:$8 sm:$0xf0]  ;;  %v295_v14 = vld [vmem:[#allocation2 + $0x3] ss:$8 sm:$0xf0] }
  0xdc   :  { %v269_v1 = vor.u32 %v268_v63, %v267_v0  ;;  %v296_v16 = vor.u32 %v295_v14, %v294_v15  ;;  %563 = vmatpush.msra.mxu0 %v1355_v32  ;;  %v322_v36 = vld [vmem:[#allocation2 + $0x4] ss:$8 sm:$0xf0]  ;;  %v349_v43 = vld [vmem:[#allocation2 + $0x5] ss:$8 sm:$0xf0] }
  0xdd   :  { %v236_v48 = vadd.f32 %v233_v46, %v215_v47  ;;  %v323_v38 = vor.u32 %v322_v36, %v321_v37  ;;  %v348_v44 = vld [vmem:[#allocation2 + $0x5] ss:$8 sm:$0xf] }
  0xde   :  { %564 = vmatpush.msra.mxu0 %v1361_v33  ;;  %v350_v45 = vor.u32 %v349_v43, %v348_v44  ;;  %v721_v36 = vld [vmem:[#allocation12 + $0x40] sm:$0xff] }
  0xdf   :  { %812 = vtanh.f32 %v236_v48  ;;  %v1420_v48 = vld [vmem:[%s1478_s4 + $0x1] ss:$0 sm:$0xff]  ;;  %s1029_s4 = smov [#allocation14]  }
  0xe0   :  { %565 = vmatpush.msra.mxu0 %v1367_v34  ;;  %s769_s9 = sshll.u32 %s1029_s4, 4  ;;  %s770_s9 = int_to_ptr.vmem [resolvable:$true] %s769_s9 }
  0xe2   :  { %566 = vmatpush.msra.mxu0 %v1376_v35 }
  0xe5   :  { %v1277_v49 = vpop.eup %812 }
  0xe6   :  { %259 = vmatmul.f32.vlgmr.msra.gmra.mxu2 %v1277_v49 }
  0xe7   :  { %459 = vmatpush.msra.mxu2 %v453_v56  ;;  %v375_v56 = vld [vmem:[#allocation2 + $0x6] ss:$8 sm:$0xf] }
  0xe9   :  { %460 = vmatpush.msra.mxu2 %v452_v57 }
  0xeb   :  { %461 = vmatpush.msra.mxu2 %v451_v58 }
  0xed   :  { %462 = vmatpush.msra.mxu2 %v450_v59 }
  0xef   :  { %463 = vmatpush.msra.mxu2 %v449_v60 }
  0xf1   :  { %464 = vmatpush.msra.mxu2 %v448_v61 }
  0xf3   :  { %465 = vmatpush.msra.mxu2 %v447_v62 }
  0xf5   :  { %466 = vmatpush.msra.mxu2 %v446_v5 }
  0xf7   :  { %467 = vmatpush.msra.mxu2 %v445_v6 }
  0xf9   :  { %468 = vmatpush.msra.mxu2 %v444_v7 }
  0xfb   :  { %469 = vmatpush.msra.mxu2 %v443_v8 }
  0xfd   :  { %470 = vmatpush.msra.mxu2 %v442_v9 }
  0xff   :  { %471 = vmatpush.msra.mxu2 %v441_v10 }
 0x101   :  { %472 = vmatpush.msra.mxu2 %v440_v11 }
 0x103   :  { %473 = vmatpush.msra.mxu2 %v439_v12 }
 0x105   :  { %474 = vmatpush.msra.mxu2 %v438_v13 }
 0x169   :  { %v260_v53 = vpop.f32.mrf.mxu2 }
 0x16a   :  { %v263_v54 = vadd.f32 %v260_v53, %v242_v52 }
 0x16c   :  { %814 = vtanh.f32 %v263_v54 }
 0x172   :  { %v1280_v55 = vpop.eup %814 }
 0x173   :  { %286 = vmatmul.f32.vlgmr.msra.gmra.mxu3 %v1280_v55 }
 0x174   :  { %528 = vmatpush.msra.mxu3 %v1286_v20 }
 0x176   :  { %529 = vmatpush.msra.mxu3 %v1288_v21 }
 0x178   :  { %530 = vmatpush.msra.mxu3 %v1292_v22 }
 0x17a   :  { %531 = vmatpush.msra.mxu3 %v1298_v23 }
 0x17c   :  { %532 = vmatpush.msra.mxu3 %v1304_v24 }
 0x17e   :  { %533 = vmatpush.msra.mxu3 %v1311_v25 }
 0x180   :  { %534 = vmatpush.msra.mxu3 %v1316_v26 }
 0x182   :  { %535 = vmatpush.msra.mxu3 %v1331_v27 }
 0x184   :  { %536 = vmatpush.msra.mxu3 %v1334_v28 }
 0x186   :  { %537 = vmatpush.msra.mxu3 %v1337_v29 }
 0x188   :  { %538 = vmatpush.msra.mxu3 %v1343_v30 }
 0x18a   :  { %539 = vmatpush.msra.mxu3 %v1352_v31 }
 0x18c   :  { %540 = vmatpush.msra.mxu3 %v1355_v32 }
 0x18e   :  { %541 = vmatpush.msra.mxu3 %v1361_v33 }
 0x190   :  { %542 = vmatpush.msra.mxu3 %v1367_v34 }
 0x192   :  { %543 = vmatpush.msra.mxu3 %v1376_v35 }
 0x1f6   :  { %v287_v2 = vpop.f32.mrf.mxu3 }
 0x1f7   :  { %v290_v3 = vadd.f32 %v287_v2, %v269_v1  ;;  %v403_v2 = vld [vmem:[#allocation2 + $0x7] ss:$8 sm:$0xf0] }
 0x1f9   :  { %816 = vtanh.f32 %v290_v3  ;;  %v402_v3 = vld [vmem:[#allocation2 + $0x7] ss:$8 sm:$0xf] }
 0x1ff   :  { %v1283_v4 = vpop.eup %816 }
 0x200   :  { %313 = vmatmul.f32.vlgmr.msrb.gmra.mxu1 %v1283_v4 }
 0x201   :  { %574 = vmatpush.msrb.mxu1 %v1286_v20 }
 0x203   :  { %575 = vmatpush.msrb.mxu1 %v1288_v21 }
 0x205   :  { %576 = vmatpush.msrb.mxu1 %v1292_v22 }
 0x207   :  { %577 = vmatpush.msrb.mxu1 %v1298_v23 }
 0x209   :  { %578 = vmatpush.msrb.mxu1 %v1304_v24 }
 0x20b   :  { %579 = vmatpush.msrb.mxu1 %v1311_v25 }
 0x20d   :  { %580 = vmatpush.msrb.mxu1 %v1316_v26 }
 0x20f   :  { %581 = vmatpush.msrb.mxu1 %v1331_v27 }
 0x211   :  { %582 = vmatpush.msrb.mxu1 %v1334_v28 }
 0x213   :  { %583 = vmatpush.msrb.mxu1 %v1337_v29 }
 0x215   :  { %584 = vmatpush.msrb.mxu1 %v1343_v30 }
 0x217   :  { %585 = vmatpush.msrb.mxu1 %v1352_v31 }
 0x219   :  { %586 = vmatpush.msrb.mxu1 %v1355_v32 }
 0x21b   :  { %587 = vmatpush.msrb.mxu1 %v1361_v33 }
 0x21d   :  { %588 = vmatpush.msrb.mxu1 %v1367_v34 }
 0x21f   :  { %589 = vmatpush.msrb.mxu1 %v1376_v35 }
 0x27d   :  { %v314_v17 = vpop.f32.mrf.mxu1 }
 0x27e   :  { %v317_v18 = vadd.f32 %v314_v17, %v296_v16 }
 0x280   :  { %818 = vtanh.f32 %v317_v18 }
 0x286   :  { %v819_v19 = vpop.eup %818 }
 0x287   :  { %340 = vmatmul.f32.vlgmr.msrb.gmra.mxu2 %v819_v19 }
 0x288   :  { %666 = vmatpush.msrb.mxu2 %v1286_v20 }
 0x28a   :  { %667 = vmatpush.msrb.mxu2 %v1288_v21 }
 0x28c   :  { %668 = vmatpush.msrb.mxu2 %v1292_v22 }
 0x28e   :  { %669 = vmatpush.msrb.mxu2 %v1298_v23 }
 0x28f   :  { %475 = vmatmul.f32.vlgmr.msra.gmra.mxu2 %v1277_v49 }
 0x290   :  { %670 = vmatpush.msrb.mxu2 %v1304_v24 }
 0x292   :  { %671 = vmatpush.msrb.mxu2 %v1311_v25 }
 0x294   :  { %672 = vmatpush.msrb.mxu2 %v1316_v26 }
 0x296   :  { %673 = vmatpush.msrb.mxu2 %v1331_v27 }
 0x297   :  { %478 = vmatmul.f32.gmra.mxu2 %v1280_v55  ;;  %v376_v55 = vld [vmem:[#allocation2 + $0x6] ss:$8 sm:$0xf0] }
 0x298   :  { %674 = vmatpush.msrb.mxu2 %v1334_v28  ;;  %v377_v57 = vor.u32 %v376_v55, %v375_v56 }
 0x29a   :  { %675 = vmatpush.msrb.mxu2 %v1337_v29 }
 0x29c   :  { %676 = vmatpush.msrb.mxu2 %v1343_v30 }
 0x29e   :  { %677 = vmatpush.msrb.mxu2 %v1352_v31 }
 0x29f   :  { %481 = vmatmul.f32.gmra.mxu2 %v1283_v4  ;;  %v404_v4 = vor.u32 %v403_v2, %v402_v3 }
 0x2a0   :  { %678 = vmatpush.msrb.mxu2 %v1355_v32 }
 0x2a2   :  { %679 = vmatpush.msrb.mxu2 %v1361_v33 }
 0x2a4   :  { %680 = vmatpush.msrb.mxu2 %v1367_v34 }
 0x2a6   :  { %681 = vmatpush.msrb.mxu2 %v1376_v35 }
 0x2a7   :  { %484 = vmatmul.f32.gmra.mxu2 %v819_v19 }
 0x30a   :  { %v341_v39 = vpop.f32.mrf.mxu2 }
 0x30b   :  { %v344_v40 = vadd.f32 %v341_v39, %v323_v38  ;;  %v720_v38 = vld [vmem:[#allocation12 + $0x38] sm:$0xff]  ;;  %v719_v39 = vld [vmem:[#allocation12 + $0x30] sm:$0xff] }
 0x30d   :  { %820 = vtanh.f32 %v344_v40  ;;  %v718_v40 = vld [vmem:[#allocation12 + $0x28] sm:$0xff] }
 0x312   :  { %v476_v49 = vpop.f32.mrf.mxu2 }
 0x313   :  { %v821_v41 = vpop.eup %820  ;;  %v477_v50 = vadd.f32 %v1420_v48, %v476_v49  ;;  %v714_v49 = vld [vmem:[#allocation12 + $0x8] sm:$0xff] }
 0x314   :  { %367 = vmatmul.f32.vlgmr.msrb.gmra.mxu3 %v821_v41  ;;  %487 = vmatmul.f32.gmra.mxu2 %v821_v41 }
 0x315   :  { %597 = vmatpush.msrb.mxu3 %v1286_v20 }
 0x317   :  { %598 = vmatpush.msrb.mxu3 %v1288_v21 }
 0x319   :  { %599 = vmatpush.msrb.mxu3 %v1292_v22 }
 0x31a   :  { %v479_v60 = vpop.f32.mrf.mxu2 }
 0x31b   :  { %600 = vmatpush.msrb.mxu3 %v1298_v23  ;;  %v480_v61 = vadd.f32 %v1420_v48, %v479_v60 }
 0x31c   :  { %544 = vmatmul.f32.vlgmr.msra.gmra.mxu3 %v526_v42 }
 0x31d   :  { %601 = vmatpush.msrb.mxu3 %v1304_v24 }
 0x31f   :  { %602 = vmatpush.msrb.mxu3 %v1311_v25 }
 0x321   :  { %603 = vmatpush.msrb.mxu3 %v1316_v26 }
 0x322   :  { %v482_v7 = vpop.f32.mrf.mxu2 }
 0x323   :  { %604 = vmatpush.msrb.mxu3 %v1331_v27  ;;  %v483_v8 = vadd.f32 %v1420_v48, %v482_v7 }
 0x325   :  { %605 = vmatpush.msrb.mxu3 %v1334_v28 }
 0x327   :  { %606 = vmatpush.msrb.mxu3 %v1337_v29 }
 0x329   :  { %607 = vmatpush.msrb.mxu3 %v1343_v30 }
 0x32a   :  { %v485_v13 = vpop.f32.mrf.mxu2 }
 0x32b   :  { %608 = vmatpush.msrb.mxu3 %v1352_v31  ;;  %v486_v14 = vadd.f32 %v1420_v48, %v485_v13 }
 0x32d   :  { %609 = vmatpush.msrb.mxu3 %v1355_v32 }
 0x32f   :  { %610 = vmatpush.msrb.mxu3 %v1361_v33 }
 0x331   :  { %611 = vmatpush.msrb.mxu3 %v1367_v34 }
 0x333   :  { %612 = vmatpush.msrb.mxu3 %v1376_v35 }
 0x335   :  { %689 = vmatpush.msra.mxu3 %v1286_v20 }
 0x337   :  { %690 = vmatpush.msra.mxu3 %v1288_v21 }
 0x339   :  { %691 = vmatpush.msra.mxu3 %v1292_v22 }
 0x33b   :  { %692 = vmatpush.msra.mxu3 %v1298_v23 }
 0x33d   :  { %693 = vmatpush.msra.mxu3 %v1304_v24 }
 0x33f   :  { %694 = vmatpush.msra.mxu3 %v1311_v25 }
 0x341   :  { %695 = vmatpush.msra.mxu3 %v1316_v26 }
 0x343   :  { %696 = vmatpush.msra.mxu3 %v1331_v27 }
 0x345   :  { %697 = vmatpush.msra.mxu3 %v1334_v28 }
 0x347   :  { %698 = vmatpush.msra.mxu3 %v1337_v29 }
 0x349   :  { %699 = vmatpush.msra.mxu3 %v1343_v30 }
 0x34b   :  { %700 = vmatpush.msra.mxu3 %v1352_v31 }
 0x34d   :  { %701 = vmatpush.msra.mxu3 %v1355_v32 }
 0x34f   :  { %702 = vmatpush.msra.mxu3 %v1361_v33 }
 0x351   :  { %703 = vmatpush.msra.mxu3 %v1367_v34 }
 0x353   :  { %704 = vmatpush.msra.mxu3 %v1376_v35 }
 0x397   :  { %v368_v46 = vpop.f32.mrf.mxu3  ;;  %v488_v18 = vpop.f32.mrf.mxu2 }
 0x398   :  { %v371_v47 = vadd.f32 %v368_v46, %v350_v45  ;;  %v489_v19 = vadd.f32 %v1420_v48, %v488_v18  ;;  %v717_v45 = vld [vmem:[#allocation12 + $0x20] sm:$0xff]  ;;  %v716_v46 = vld [vmem:[#allocation12 + $0x18] sm:$0xff] }
 0x39a   :  { %822 = vtanh.f32 %v371_v47  ;;  %v715_v47 = vld [vmem:[#allocation12 + $0x10] sm:$0xff] }
 0x39f   :  { %v545_v51 = vpop.f32.mrf.mxu3 }
 0x3a0   :  { %v823_v52 = vpop.eup %822  ;;  %v548_v53 = vadd.f32 %v545_v51, %v477_v50  ;;  %v713_v50 = vld [vmem:[#allocation12] sm:$0xff] }
 0x3a1   :  { %394 = vmatmul.f32.vlgmr.msrb.gmra.mxu0 %v823_v52  ;;  %490 = vmatmul.f32.gmra.mxu2 %v823_v52 }
 0x3a2   :  { %824 = vtanh.f32 %v548_v53  ;;  %620 = vmatpush.msrb.mxu0 %v1286_v20 }
 0x3a4   :  { %621 = vmatpush.msrb.mxu0 %v1288_v21 }
 0x3a6   :  { %622 = vmatpush.msrb.mxu0 %v1292_v22 }
 0x3a8   :  { %v825_v54 = vpop.eup %824  ;;  %623 = vmatpush.msrb.mxu0 %v1298_v23 }
 0x3a9   :  { %567 = vmatmul.f32.vlgmr.msra.gmra.mxu0 %v825_v54 }
 0x3aa   :  { %624 = vmatpush.msrb.mxu0 %v1304_v24 }
 0x3ac   :  { %625 = vmatpush.msrb.mxu0 %v1311_v25 }
 0x3ae   :  { %626 = vmatpush.msrb.mxu0 %v1316_v26 }
 0x3b0   :  { %627 = vmatpush.msrb.mxu0 %v1331_v27 }
 0x3b2   :  { %628 = vmatpush.msrb.mxu0 %v1334_v28 }
 0x3b4   :  { %629 = vmatpush.msrb.mxu0 %v1337_v29 }
 0x3b6   :  { %630 = vmatpush.msrb.mxu0 %v1343_v30 }
 0x3b8   :  { %631 = vmatpush.msrb.mxu0 %v1352_v31 }
 0x3ba   :  { %632 = vmatpush.msrb.mxu0 %v1355_v32 }
 0x3bc   :  { %633 = vmatpush.msrb.mxu0 %v1361_v33 }
 0x3be   :  { %634 = vmatpush.msrb.mxu0 %v1367_v34 }
 0x3c0   :  { %635 = vmatpush.msrb.mxu0 %v1376_v35 }
 0x41e   :  { %v395_v58 = vpop.f32.mrf.mxu0 }
 0x41f   :  { %v398_v59 = vadd.f32 %v395_v58, %v377_v57 }
 0x421   :  { %826 = vtanh.f32 %v398_v59 }
 0x426   :  { %v568_v62 = vpop.f32.mrf.mxu0 }
 0x427   :  { %v827_v63 = vpop.eup %826  ;;  %v571_v0 = vadd.f32 %v568_v62, %v480_v61 }
 0x428   :  { %421 = vmatmul.f32.vlgmr.msra.gmra.mxu1 %v827_v63  ;;  %493 = vmatmul.f32.gmra.mxu2 %v827_v63 }
 0x429   :  { %828 = vtanh.f32 %v571_v0  ;;  %643 = vmatpush.msra.mxu1 %v1286_v20 }
 0x42b   :  { %644 = vmatpush.msra.mxu1 %v1288_v21 }
 0x42d   :  { %645 = vmatpush.msra.mxu1 %v1292_v22 }
 0x42f   :  { %v829_v1 = vpop.eup %828  ;;  %646 = vmatpush.msra.mxu1 %v1298_v23  ;;  %v491_v23 = vpop.f32.mrf.mxu2 }
 0x430   :  { %590 = vmatmul.f32.vlgmr.msrb.gmra.mxu1 %v829_v1 }
 0x431   :  { %647 = vmatpush.msra.mxu1 %v1304_v24  ;;  %v492_v24 = vadd.f32 %v1420_v48, %v491_v23 }
 0x433   :  { %648 = vmatpush.msra.mxu1 %v1311_v25 }
 0x435   :  { %649 = vmatpush.msra.mxu1 %v1316_v26 }
 0x437   :  { %650 = vmatpush.msra.mxu1 %v1331_v27 }
 0x439   :  { %651 = vmatpush.msra.mxu1 %v1334_v28  ;;  %v728_v28 = vld [vmem:[#allocation12 + $0x78] sm:$0xff] }
 0x43a   :  { %733 = vmatpush.msra.mxu0 %v728_v28 }
 0x43b   :  { %652 = vmatpush.msra.mxu1 %v1337_v29  ;;  %v727_v29 = vld [vmem:[#allocation12 + $0x70] sm:$0xff] }
 0x43c   :  { %734 = vmatpush.msra.mxu0 %v727_v29 }
 0x43d   :  { %653 = vmatpush.msra.mxu1 %v1343_v30  ;;  %v726_v30 = vld [vmem:[#allocation12 + $0x68] sm:$0xff] }
 0x43e   :  { %735 = vmatpush.msra.mxu0 %v726_v30 }
 0x43f   :  { %654 = vmatpush.msra.mxu1 %v1352_v31  ;;  %v725_v31 = vld [vmem:[#allocation12 + $0x60] sm:$0xff] }
 0x440   :  { %736 = vmatpush.msra.mxu0 %v725_v31 }
 0x441   :  { %655 = vmatpush.msra.mxu1 %v1355_v32 }
 0x443   :  { %656 = vmatpush.msra.mxu1 %v1361_v33  ;;  %v724_v33 = vld [vmem:[#allocation12 + $0x58] sm:$0xff] }
 0x444   :  { %737 = vmatpush.msra.mxu0 %v724_v33 }
 0x445   :  { %657 = vmatpush.msra.mxu1 %v1367_v34  ;;  %v723_v34 = vld [vmem:[#allocation12 + $0x50] sm:$0xff] }
 0x446   :  { %738 = vmatpush.msra.mxu0 %v723_v34 }
 0x447   :  { %658 = vmatpush.msra.mxu1 %v1376_v35  ;;  %v722_v35 = vld [vmem:[#allocation12 + $0x48] sm:$0xff] }
 0x448   :  { %739 = vmatpush.msra.mxu0 %v722_v35 }
 0x44a   :  { %740 = vmatpush.msra.mxu0 %v721_v36 }
 0x44c   :  { %741 = vmatpush.msra.mxu0 %v720_v38 }
 0x44e   :  { %742 = vmatpush.msra.mxu0 %v719_v39 }
 0x450   :  { %743 = vmatpush.msra.mxu0 %v718_v40 }
 0x452   :  { %744 = vmatpush.msra.mxu0 %v717_v45 }
 0x454   :  { %745 = vmatpush.msra.mxu0 %v716_v46 }
 0x456   :  { %746 = vmatpush.msra.mxu0 %v715_v47 }
 0x458   :  { %747 = vmatpush.msra.mxu0 %v714_v49 }
 0x45a   :  { %748 = vmatpush.msra.mxu0 %v713_v50 }
 0x4a5   :  { %v422_v5 = vpop.f32.mrf.mxu1 }
 0x4a6   :  { %v425_v6 = vadd.f32 %v422_v5, %v404_v4 }
 0x4a8   :  { %830 = vtanh.f32 %v425_v6 }
 0x4ab   :  { %v494_v32 = vpop.f32.mrf.mxu2 }
 0x4ac   :  { %v495_v41 = vadd.f32 %v1420_v48, %v494_v32 }
 0x4ad   :  { %v591_v9 = vpop.f32.mrf.mxu1 }
 0x4ae   :  { %v831_v10 = vpop.eup %830  ;;  %v594_v11 = vadd.f32 %v591_v9, %v483_v8 }
 0x4af   :  { %428 = vst [vmem:[#allocation14] sm:$0xff] %v831_v10  ;;  %496 = vmatmul.f32.gmra.mxu2 %v831_v10 }
 0x4b0   :  { %832 = vtanh.f32 %v594_v11 }
 0x4b6   :  { %v833_v12 = vpop.eup %832 }
 0x4b7   :  { %613 = vmatmul.f32.vlgmr.msrb.gmra.mxu3 %v833_v12 }
 0x532   :  { %v497_v37 = vpop.f32.mrf.mxu2 }
 0x533   :  { %v498_v51 = vadd.f32 %v1420_v48, %v497_v37  ;;  %v811_v48 = vld [vmem:[%s1480_s6] ss:$0 sm:$0xff] }
 0x53a   :  { %v614_v15 = vpop.f32.mrf.mxu3 }
 0x53b   :  { %v617_v16 = vadd.f32 %v614_v15, %v486_v14 }
 0x53d   :  { %834 = vtanh.f32 %v617_v16 }
 0x543   :  { %v835_v17 = vpop.eup %834 }
 0x544   :  { %636 = vmatmul.f32.vlgmr.msrb.gmra.mxu0 %v835_v17 }
 0x5c1   :  { %v637_v20 = vpop.f32.mrf.mxu0 }
 0x5c2   :  { %v640_v21 = vadd.f32 %v637_v20, %v489_v19 }
 0x5c4   :  { %836 = vtanh.f32 %v640_v21 }
 0x5ca   :  { %v837_v22 = vpop.eup %836 }
 0x5cb   :  { %659 = vmatmul.f32.vlgmr.msra.gmra.mxu1 %v837_v22 }
 0x648   :  { %v660_v25 = vpop.f32.mrf.mxu1 }
 0x649   :  { %v663_v26 = vadd.f32 %v660_v25, %v492_v24 }
 0x64b   :  { %838 = vtanh.f32 %v663_v26 }
 0x651   :  { %v839_v27 = vpop.eup %838 }
 0x652   :  { %682 = vmatmul.f32.vlgmr.msrb.gmra.mxu2 %v839_v27 }
 0x6d5   :  { %v683_v42 = vpop.f32.mrf.mxu2 }
 0x6d6   :  { %v686_v43 = vadd.f32 %v683_v42, %v495_v41 }
 0x6d8   :  { %840 = vtanh.f32 %v686_v43 }
 0x6de   :  { %v841_v44 = vpop.eup %840 }
 0x6df   :  { %705 = vmatmul.f32.vlgmr.msra.gmra.mxu3 %v841_v44 }
 0x762   :  { %v706_v52 = vpop.f32.mrf.mxu3 }
 0x763   :  { %v709_v53 = vadd.f32 %v706_v52, %v498_v51 }
 0x765   :  { %842 = vtanh.f32 %v709_v53 }
 0x76b   :  { %v843_v54 = vpop.eup %842 }
 0x76c   :  { %712 = vst [vmem:[#allocation14 + $0x8] sm:$0xff] %v843_v54  ;;  %749 = vmatmul.f32.vlgmr.msra.gmra.mxu0 %v843_v54 }
 0x76d   :  { %777 = dma.vmem_to_hbm [thread:$0]  %s770_s9, 256, %s772_s12, [#allocation15], %s1023_s13, %s1023_s13, %s1024_s14  }
 0x7e9   :  { %v750_v55 = vpop.f32.mrf.mxu0 }
 0x7ea   :  { %v751_v56 = vadd.f32 %v811_v48, %v750_v55 }
 0x7ec   :  { %753 = vst [vmem:[#allocation13] sm:$0xff] %v751_v56 }
 0x7ed   :  { %764 = dma.vmem_to_hbm [thread:$0]  %s760_s18, 128, %s762_s19, [#allocation6]  }
 0x7ee   :  { %1018 = dma.done.wait [#allocation6], 128  }
 0x7ef   :  { %1019 = vsyncadd [#allocation6], 4294967168 }
 0x7f0   :  { %1020 = dma.done.wait [#allocation15], 256  }
 0x7f1   :  { %1021 = vsyncadd [#allocation15], 4294967040 }
 0x7f2   :  { %786 = vsyncpa [#allocation5], 1 }
 0x7f3   :  { %787 = vsyncpa [#allocation8], 1 }
 0x7f4   :  { %788 = vsyncpa [#allocation11], 1 }
 0x7f5   :  { %789 = vsyncpa [#allocation6], 1 }
 0x7f6   :  { %790 = vsyncpa [#allocation15], 1 }

</bundles_post_ra>
